<compile_context>
chip_gen: v6e
topology: v6e:2x2x1
jax: 0.10.0
libtpu: 0.0.40
codegen_flags: <defaults>
</compile_context>

<pallas_src>
import functools

import jax
import jax.numpy as jnp
from jax.experimental import pallas as pl
from jax.experimental.pallas import tpu as pltpu

_LANE = 128


def _gap_fc_kernel(x_ref, w_ref, b_ref, o_ref, acc_ref, *, inv_hw):
    """x_ref: (bn, C, hw_chunk)   w_ref: (C, Kpad) bf16   b_ref: (1, Kpad) f32
    o_ref: (bn, Kpad) f32         acc_ref: VMEM (bn, C) f32 accumulator."""
    k = pl.program_id(1)

    @pl.when(k == 0)
    def _():
        acc_ref[...] = jnp.zeros_like(acc_ref)

    # Upcast after the (narrow) DMA; reduce over the spatial lane axis (XLU).
    x = x_ref[...].astype(jnp.float32)
    acc_ref[...] += jnp.sum(x, axis=-1)                    # (bn, C), C on lanes

    @pl.when(k == pl.num_programs(1) - 1)
    def _():
        feat = (acc_ref[...] * inv_hw).astype(jnp.bfloat16)
        logits = jnp.dot(feat, w_ref[...], preferred_element_type=jnp.float32)
        o_ref[...] = (logits + b_ref[...]).astype(o_ref.dtype)


def _divisors(total, step):
    """Divisors of `total` that are multiples of `step`, plus `total` itself."""
    cands = {total}
    for d in range(step, total + 1, step):
        if total % d == 0:
            cands.add(d)
    return sorted(cands)


def _select_tiles(n, c, hw, itemsize, budget_bytes, split_batch):
    """Jointly pick (bn, hw_chunk, hw_eff) so one (bn, C, hw_chunk) input block
    fits within budget_bytes.  hw_eff >= hw is the (possibly 128-padded)
    spatial extent the kernel iterates over."""
    # bn: the (bn, Kpad) output block needs bn % 8 == 0 or bn == N (full dim).
    bn_cands = [d for d in _divisors(n, 8) if d % 8 == 0 or d == n]
    if split_batch and n >= 16:
        halves = [d for d in bn_cands if d <= n // 2]
        if halves:
            bn_cands = halves        # >= 2 batch grid steps -> both TCs busy
    # hw_chunk: lane axis, must be a multiple of 128 or the full dim.
    hw_cands = [d for d in _divisors(hw, _LANE) if d % _LANE == 0 or d == hw]

    best = None
    for bn in bn_cands:
        for hwc in hw_cands:
            if bn * c * hwc * itemsize <= budget_bytes:
                score = bn * hwc     # fewer grid steps == less fixed overhead
                if best is None or score > best[0]:
                    best = (score, bn, hwc)
    if best is not None:
        return best[1], best[2], hw

    # Nothing fits (awkward HW with no 128-multiple divisor, or huge C):
    # zero-pad HW to a multiple of 128 so the lane axis can be chunked finely.
    # TODO(synk): very wide C would additionally want a channel-tiling grid
    # axis; not needed for realistic classification-head widths.
    bn = bn_cands[0]
    hw_eff = ((hw + _LANE - 1) // _LANE) * _LANE if hw > _LANE else hw
    hwc_opts = [d for d in _divisors(hw_eff, _LANE)
                if d % _LANE == 0 or d == hw_eff]
    hwc = hwc_opts[0]
    for d in hwc_opts:               # ascending; keep the largest that fits
        if bn * c * d * itemsize <= budget_bytes:
            hwc = d
    return bn, hwc, hw_eff


def _tpu_config():
    """Per-generation budgets: v7x has 64 MiB VMEM/TC and 2 TCs; v5e/v6e have
    128 MiB VMEM and 1 TC."""
    kind = ""
    try:
        kind = jax.devices()[0].device_kind.lower()
    except Exception:
        pass
    if "v7" in kind or "7x" in kind:
        return dict(vmem_limit_bytes=48 * 1024 * 1024,
                    block_budget_bytes=5 * 1024 * 1024,
                    split_batch=True)
    return dict(vmem_limit_bytes=64 * 1024 * 1024,
                block_budget_bytes=8 * 1024 * 1024,
                split_batch=False)


def prepare_fc_params(fc_weight, fc_bias):
    """One-time prep of the fc head params (PyTorch layout (K, C), (K,)).

    Returns (w_pad, b_pad): weight as (C, Kpad) bf16 and bias as (1, Kpad)
    f32, with Kpad = num_classes rounded up to a full 128-lane width (zero
    padded -> padded logit columns are sliced off by the wrapper)."""
    num_classes, c = fc_weight.shape
    k_pad = max(_LANE, ((num_classes + _LANE - 1) // _LANE) * _LANE)
    w = jnp.zeros((c, k_pad), jnp.bfloat16)
    w = w.at[:, :num_classes].set(fc_weight.T.astype(jnp.bfloat16))
    b = jnp.zeros((1, k_pad), jnp.float32)
    b = b.at[0, :num_classes].set(fc_bias.astype(jnp.float32))
    return w, b


def base_model_forward(x_nchw, w_pad, b_pad, num_classes,
                       block_budget_bytes=None, vmem_limit_bytes=None):
    """x_nchw: (N, C, H, W) in its native dtype (no transpose is performed);
    w_pad/b_pad from prepare_fc_params.  Returns logits (N, num_classes) f32."""
    n, c, h, w = x_nchw.shape
    hw = h * w
    k_pad = w_pad.shape[1]

    cfg = _tpu_config()
    budget = block_budget_bytes or cfg["block_budget_bytes"]
    vmem_limit = vmem_limit_bytes or cfg["vmem_limit_bytes"]

    # Native NCHW layout, flattened spatially: HW sits on the lane axis.
    x = x_nchw.reshape(n, c, hw)

    bn, hw_chunk, hw_eff = _select_tiles(n, c, hw, x.dtype.itemsize,
                                         budget, cfg["split_batch"])
    if hw_eff != hw:
        x = jnp.pad(x, ((0, 0), (0, 0), (0, hw_eff - hw)))
    grid = (n // bn, hw_eff // hw_chunk)

    kernel = functools.partial(_gap_fc_kernel, inv_hw=1.0 / float(hw))

    out = pl.pallas_call(
        kernel,
        out_shape=jax.ShapeDtypeStruct((n, k_pad), jnp.float32),
        grid_spec=pltpu.PrefetchScalarGridSpec(
            num_scalar_prefetch=0,
            grid=grid,
            in_specs=[
                pl.BlockSpec((bn, c, hw_chunk), lambda i, k: (i, 0, k)),
                # Constant across the grid.  TODO(synk): pipeline_mode=
                # pl.Buffered(1) would halve their VMEM residency further.
                pl.BlockSpec((c, k_pad), lambda i, k: (0, 0)),
                pl.BlockSpec((1, k_pad), lambda i, k: (0, 0)),
            ],
            out_specs=pl.BlockSpec((bn, k_pad), lambda i, k: (i, 0)),
            scratch_shapes=[pltpu.VMEM((bn, c), jnp.float32)],
        ),
        compiler_params=pltpu.CompilerParams(
            dimension_semantics=("parallel", "arbitrary"),
            vmem_limit_bytes=vmem_limit,
        ),
    )(x, w_pad, b_pad)

    return out[:, :num_classes]


if __name__ == "__main__":
    num_classes = 10
    batch, channels, spatial = 8, 32, 16   # num_features = channels

    key = jax.random.PRNGKey(0)
    kx, kw, kb = jax.random.split(key, 3)

    x = jax.random.normal(kx, (batch, channels, spatial, spatial),
                          dtype=jnp.float32)
    # PyTorch Linear layout: (out_features, in_features).
    fc_weight = jax.random.normal(kw, (num_classes, channels),
                                  dtype=jnp.float32) * 0.05
    fc_bias = jax.random.normal(kb, (num_classes,), dtype=jnp.float32) * 0.05

    # Pay the fc-param transpose/pad once, not per forward call.
    w_pad, b_pad = prepare_fc_params(fc_weight, fc_bias)

    # Small explicit block budget so the demo exercises the multi-step
    # spatial-reduction grid; real sizes use the per-generation defaults.
    logits = base_model_forward(x, w_pad, b_pad, num_classes,
                                block_budget_bytes=128 * 1024)
    logits = jax.block_until_ready(logits)

    # Sanity check against a plain-JAX reference (fc weights are bf16 in-kernel).
    ref = jnp.mean(x, axis=(2, 3)) @ fc_weight.T + fc_bias
    assert logits.shape == (batch, num_classes)
    assert jnp.allclose(logits, ref, atol=2e-3, rtol=1e-2)

    print("KERNEL_OK")
</pallas_src>

<mosaic_0001>
module attributes {stable_mosaic.version = 11 : i64} {
  func.func @_gap_fc_kernel(%arg0: i32, %arg1: i32, %arg2: memref<8x32x128xf32, #tpu.memory_space<vmem>>, %arg3: memref<32x128xbf16, #tpu.memory_space<vmem>>, %arg4: memref<1x128xf32, #tpu.memory_space<vmem>>, %arg5: memref<8x128xf32, #tpu.memory_space<vmem>>, %arg6: memref<8x32xf32, #tpu.memory_space<vmem>>) attributes {dimension_semantics = [#tpu.dimension_semantics<parallel>, #tpu.dimension_semantics<arbitrary>], iteration_bounds = array<i64: 1, 2>, scalar_prefetch = 0 : i64, scratch_operands = 1 : i64, tpu.core_type = #tpu.core_type<tc>, window_params = [{transform_indices = @transform_0, window_bounds = array<i64: 8, 32, 128>}, {pipeline_mode = #tpu.pipeline_mode<synchronous>, transform_indices = @transform_1, window_bounds = array<i64: 32, 128>}, {pipeline_mode = #tpu.pipeline_mode<synchronous>, transform_indices = @transform_2, window_bounds = array<i64: 1, 128>}, {transform_indices = @transform_3, window_bounds = array<i64: 8, 128>}]} {
    %c0_i32 = arith.constant 0 : i32
    %0 = arith.cmpi eq, %arg1, %c0_i32 : i32
    %1 = arith.extui %0 : i1 to i32
    %c0_i32_0 = arith.constant 0 : i32
    %2 = arith.cmpi ne, %1, %c0_i32_0 : i32
    scf.if %2 {
      %cst_8 = arith.constant 0.000000e+00 : f32
      %11 = vector.broadcast %cst_8 : f32 to vector<8x32xf32>
      %c0_9 = arith.constant 0 : index
      %c0_10 = arith.constant 0 : index
      %12 = vector.load %arg6[%c0_9, %c0_10] : memref<8x32xf32, #tpu.memory_space<vmem>>, vector<8x32xf32>
      tpu.vector_store %arg6[%c0_9, %c0_10], %11 {strides = array<i32>} : memref<8x32xf32, #tpu.memory_space<vmem>>, vector<8x32xf32>,
    } else {
    }
    %c0 = arith.constant 0 : index
    %c0_1 = arith.constant 0 : index
    %c0_2 = arith.constant 0 : index
    %3 = vector.load %arg2[%c0, %c0_1, %c0_2] : memref<8x32x128xf32, #tpu.memory_space<vmem>>, vector<8x32x128xf32>
    %c0_3 = arith.constant 0 : index
    %c0_4 = arith.constant 0 : index
    %4 = vector.load %arg6[%c0_3, %c0_4] : memref<8x32xf32, #tpu.memory_space<vmem>>, vector<8x32xf32>
    %cst = arith.constant dense<0.000000e+00> : vector<8x32xf32>
    %5 = vector.multi_reduction <add>, %3, %cst [2] : vector<8x32x128xf32> to vector<8x32xf32>
    %6 = arith.addf %4, %5 : vector<8x32xf32>
    %c0_5 = arith.constant 0 : index
    %c0_6 = arith.constant 0 : index
    %7 = vector.load %arg6[%c0_5, %c0_6] : memref<8x32xf32, #tpu.memory_space<vmem>>, vector<8x32xf32>
    tpu.vector_store %arg6[%c0_5, %c0_6], %6 {strides = array<i32>} : memref<8x32xf32, #tpu.memory_space<vmem>>, vector<8x32xf32>,
    %c1_i32 = arith.constant 1 : i32
    %8 = arith.cmpi eq, %arg1, %c1_i32 : i32
    %9 = arith.extui %8 : i1 to i32
    %c0_i32_7 = arith.constant 0 : i32
    %10 = arith.cmpi ne, %9, %c0_i32_7 : i32
    scf.if %10 {
      %c0_8 = arith.constant 0 : index
      %c0_9 = arith.constant 0 : index
      %11 = vector.load %arg6[%c0_8, %c0_9] : memref<8x32xf32, #tpu.memory_space<vmem>>, vector<8x32xf32>
      %cst_10 = arith.constant 3.906250e-03 : f32
      %12 = vector.broadcast %cst_10 : f32 to vector<8x32xf32>
      %13 = arith.mulf %11, %12 : vector<8x32xf32>
      %14 = arith.truncf %13 : vector<8x32xf32> to vector<8x32xbf16>
      %c0_11 = arith.constant 0 : index
      %c0_12 = arith.constant 0 : index
      %15 = vector.load %arg3[%c0_11, %c0_12] : memref<32x128xbf16, #tpu.memory_space<vmem>>, vector<32x128xbf16>
      %cst_13 = arith.constant dense<0.000000e+00> : vector<8x128xf32>
      %16 = tpu.matmul %14, %15, %cst_13 {dimension_numbers = #tpu.dot_dimension_numbers<[1], [0], [0], [1], [0, 0, 1, 1], [], []>} : vector<8x32xbf16>, vector<32x128xbf16>, vector<8x128xf32> -> vector<8x128xf32>
      %c0_14 = arith.constant 0 : index
      %c0_15 = arith.constant 0 : index
      %17 = vector.load %arg4[%c0_14, %c0_15] : memref<1x128xf32, #tpu.memory_space<vmem>>, vector<1x128xf32>
      %18 = vector.broadcast %17 : vector<1x128xf32> to vector<8x128xf32>
      %19 = arith.addf %16, %18 : vector<8x128xf32>
      %c0_16 = arith.constant 0 : index
      %c0_17 = arith.constant 0 : index
      %20 = vector.load %arg5[%c0_16, %c0_17] : memref<8x128xf32, #tpu.memory_space<vmem>>, vector<8x128xf32>
      tpu.vector_store %arg5[%c0_16, %c0_17], %19 {strides = array<i32>} : memref<8x128xf32, #tpu.memory_space<vmem>>, vector<8x128xf32>,
    } else {
    }
    return
  }
  func.func @transform_0(%arg0: i32, %arg1: i32) -> (i32, i32, i32) {
    %c0_i32 = arith.constant 0 : i32
    %c0_i32_0 = arith.constant 0 : i32
    return %arg0, %c0_i32, %arg1 : i32, i32, i32
  }
  func.func @transform_1(%arg0: i32, %arg1: i32) -> (i32, i32) {
    %c0_i32 = arith.constant 0 : i32
    %c0_i32_0 = arith.constant 0 : i32
    %c0_i32_1 = arith.constant 0 : i32
    return %c0_i32, %c0_i32_0 : i32, i32
  }
  func.func @transform_2(%arg0: i32, %arg1: i32) -> (i32, i32) {
    %c0_i32 = arith.constant 0 : i32
    %c0_i32_0 = arith.constant 0 : i32
    %c0_i32_1 = arith.constant 0 : i32
    return %c0_i32, %c0_i32_0 : i32, i32
  }
  func.func @transform_3(%arg0: i32, %arg1: i32) -> (i32, i32) {
    %c0_i32 = arith.constant 0 : i32
    %c0_i32_0 = arith.constant 0 : i32
    return %arg0, %c0_i32 : i32, i32
  }
}

</mosaic_0001>

<bundles_post_ra>
// kernel: tpu_custom_call.1
= control target key start
LH: loop header
LB: loop body
LE: loop exit
PB: predicated region body
PF: predicated region fallthrough
CT: control target
= control target key end

     0   :  { %8 = vsyncpa [#allocation4], 0  ;;  %s1251_s0 = inlined_call_operand.hbm [shape: f32[8,32,256], index: 0, kind: input, shape index: {}]   ;;  %s1252_s1 = inlined_call_operand.hbm [shape: bf16[32,128], index: 1, kind: input, shape index: {}]   ;;  %s1253_s2 = inlined_call_operand.vmem [shape: f32[1,128], index: 2, kind: input, shape index: {}]   ;;  %s1254_s3 = inlined_call_operand.hbm [shape: f32[8,128], index: 3, kind: output, shape index: {}]  }
   0x1   :  { %10 = vsyncpa [#allocation4 + $0x1], 0 }
   0x2   :  { %11 = vsyncpa [#allocation7], 0 }
   0x3   :  { %12 = vsyncpa [#allocation5], 0  ;;  %s966_s12 = smov 0   ;;  %s968_s13 = smov 0  }
   0x4   :  { %s970_s14 = smov 0   ;;  %s972_s15 = smov 0  }
   0x5   :  { %s974_s16 = smov 0   ;;  %s976_s17 = smov 0  }
   0x6 LB: > { %s684_s18 = sadd.s32 4294967295, %s933_s17   ;;  %p46_p0 = scmp.ne.s32.totalorder %s921_s14, %s917_s13  ;;  %s933_s17 = sphi %s976_s17, %s18_s17   ;;  %s929_s16 = sphi %s974_s16, %s1267_s16   ;;  %s925_s15 = sphi %s972_s15, %s1266_s15   ;;  %s921_s14 = sphi %s970_s14, %s1265_s14   ;;  %s917_s13 = sphi %s968_s13, %s1264_s13   ;;  %s913_s12 = sphi %s966_s12, %s1263_s12  }
   0x7   : > { %p47_p1 = scmp.eq.s32.totalorder %s933_s17, 0  ;;  %p52_p2 = scmp.ne.s32.totalorder %s917_s13, %s913_s12 }
   0x8   : > { %p1001_p3 = scmp.eq.s32.totalorder %s684_s18, 0  ;;  %p685_p4 = scmp.ge.s32.totalorder %s933_s17, 1 }
   0x9   : > { %p48_p5 = por %p47_p1, %p46_p0  ;;  %p131_p6 = scmp.lt.s32.totalorder %s933_s17, 3 }
   0xa   : > { %p1009_p7 = por %p1001_p3, %p52_p2  ;;  %s935_s22 = smov [#allocation6]  }
   0xb   : > { %p1013_p8 = pnand %p685_p4, %p131_p6  ;;  %s143_s23 = sshll.u32 %s935_s22, 4  ;;  %s144_s23 = int_to_ptr.vmem [resolvable:$true] %s143_s23 }
   0xc   : > { %s1257_s20 = scalar_select %p1009_p7, 1, 0 }
   0xd   : > { %p724_p9 = pneg %p1013_p8  ;;  %p733_p11 = scmp.lt.s32.totalorder %s933_s17, 2 }
   0xe   : > { %s39_s25 = sadd.s32 1, %s921_s14  ;;  %s808_s27 = scalar_lea.vmem %s144_s23, 256 }
   0xf   : > { %p1021_p10 = pnand %p724_p9, %p1001_p3  ;;  %p1027_p12 = pnand %p733_p11, %p48_p5 }
  0x10   : > { %p809_p0 = scmp.ne.s32.totalorder %s144_s23, %s808_s27  ;;  %p816_p4 = scmp.lt.s32.totalorder %s144_s23, %s144_s23 }
  0x11   : > { %p799_p13 = pneg %p1021_p10  ;;  %p817_p6 = scmp.lt.s32.totalorder %s808_s27, %s808_s27 }
  0x13   : > { %p811_p1 = pnand %p809_p0, %p799_p13  ;;  %p818_p7 = por %p817_p6, %p816_p4 }
  0x15   : > { %p812_p2 = pneg %p811_p1 }
  0x17   : > { %p819_p9 = pnand %p818_p7, %p812_p2 }
  0x19   : > { %822 = shalt.err (!%p819_p9)
}
  0x1a   : > { %s936_s28 = smov 64   ;;  %s937_s29 = smov 4  }
  0x1b   : > { %727 = dma.hbm_to_vmem [thread:$0]  (!%p1021_p10), %s1252_s1, 256, %s144_s23, [#allocation7], %s936_s28, %s936_s28, %s937_s29  }
  0x1c   : > { %s27_s5 = sadd.s32 1, %s929_s16  ;;  %s160_s6 = sand.u32 1, %s921_s14  }
  0x1d   : > { %p28_p5 = scmp.ge.s32.totalorder %s27_s5, 2  ;;  %s688_s7 = sshll.u32 %s160_s6, 8 }
  0x1e   : > { %s689_s8 = sshll.u32 %s929_s16, 7  ;;  %s164_s22 = scalar_lea.vmem [#allocation3], %s688_s7 }
  0x1f   : > { %s1269_s5 = smov (%p28_p5, %s27_s5), 0  ;;  %s1046_s11 = scalar_lea.hbm %s1251_s0, %s689_s8 }
  0x20   : > { %s35_s12 = ssub.s32 %s929_s16, %s1269_s5  ;;  %s173_s24 = sshll.u32 %s164_s22, 4  ;;  %s174_s24 = int_to_ptr.vmem [resolvable:$true] %s173_s24 }
  0x21   : > { %p37_p7 = scmp.eq.s32.totalorder %s35_s12, 0  ;;  %s161_s23 = scalar_lea.sflag [#allocation4], %s160_s6 }
  0x22   : > { %p825_p10 = pneg %p1027_p12  ;;  %s836_s28 = scalar_lea.vmem %s174_s24, 4096 }
  0x23   : > { %s1051_s27 = scalar_select %p37_p7, %s921_s14, %s39_s25  }
  0x24   : > { %p837_p11 = scmp.ne.s32.totalorder %s174_s24, %s836_s28  ;;  %s938_s29 = smov [#allocation3]  }
  0x25   : > { %s841_s30 = sshll.u32 %s938_s29, 4  ;;  %s842_s30 = int_to_ptr.vmem [resolvable:$false] %s841_s30 }
  0x26   : > { %p839_p13 = pnand %p837_p11, %p825_p10  ;;  %s843_s4 = scalar_lea.vmem %s842_s30, 8192 }
  0x27   : > { %p844_p1 = scmp.lt.s32.totalorder %s174_s24, %s842_s30  ;;  %p845_p2 = scmp.lt.s32.totalorder %s843_s4, %s836_s28 }
  0x28   : > { %p840_p0 = pneg %p839_p13 }
  0x29   : > { %p846_p4 = por %p845_p2, %p844_p1 }
  0x2b   : > { %p847_p6 = pnand %p846_p4, %p840_p0 }
  0x2d   : > { %850 = shalt.err (!%p847_p6)
}
  0x2e   : > { %s939_s7 = smov 256   ;;  %s940_s25 = smov 128  }
  0x2f   : > { %s941_s6 = smov 8   ;;  %185 = sbr.rel (%p1013_p8) target bundleno = 497 (0x1f1), region = 32 }
  0x30   : > { %731 = dma.hbm_to_vmem [thread:$0]  (!%p1027_p12), %s1046_s11, 4096, %s174_s24, %s161_s23, %s939_s7, %s940_s25, %s941_s6  }
  0x31   : > { %s187_s8 = sand.u32 (!%p1013_p8), 1, %s917_s13   ;;  %p1261_p9 = scmp.ne.s32.totalorder (!%p1013_p8), %s1257_s20, 0 }
  0x32   : > { %s691_s9 = sshll.u32 (!%p1013_p8), %s187_s8, 8  ;;  %s188_s10 = scalar_lea.sflag (!%p1013_p8), [#allocation4], %s187_s8 }
  0x33   : > { %s1061_s12 = scalar_lea.vmem (!%p1013_p8), [#allocation3], %s691_s9 }
  0x34   : > { %900 = dma.done.wait (%p1261_p9), %s188_s10, 4096  }
  0x35   : > { %902 = vsyncadd (%p1261_p9), %s188_s10, 4294963200 }
  0x36   : > { %904 = dma.done.wait (%p1001_p3), [#allocation7], 256  }
  0x37   : > { %906 = vsyncadd (%p1001_p3), [#allocation7], 4294967040  ;;  %p693_p8 = scmp.ne.s32.totalorder %s925_s15, 0 }
  0x39   : > { %218 = sbr.rel (%p693_p8) target bundleno = 64 (0x40), region = 44 }
  0x3e   : > { %vm219_vm0 = vcmask 261120   ;;  %v942_v0 = vmov 0.0  }
  0x3f   : > { %220 = vst.msk [vmem:[#allocation2] sm:$0xff] %vm219_vm0, %v942_v0 }
  0x40 PF: > { %v225_v1 = vld [vmem:[%s1061_s12 + $0x20] sm:$0xff]  ;;  %v226_v3 = vld [vmem:[%s1061_s12 + $0x28] sm:$0xff]  ;;  %v227_v5 = vld [vmem:[%s1061_s12 + $0x30] sm:$0xff]  ;;  %v350_v49 = vlaneseq  ;;  %vm361_vm1 = vcmask 130112   ;;  %vm368_vm2 = vcmask 195712   ;;  %vm375_vm3 = vcmask 261312  }
  0x41   : > { %v221_v2 = vld [vmem:[%s1061_s12] sm:$0xff]  ;;  %262 = vadd.xlane.f32.xlu1 %v225_v1  ;;  %v222_v4 = vld [vmem:[%s1061_s12 + $0x8] sm:$0xff]  ;;  %v223_v6 = vld [vmem:[%s1061_s12 + $0x10] sm:$0xff]  ;;  %vm510_vm4 = vcmask 1041409   ;;  %vm512_vm5 = vcmask 1042434   ;;  %vm514_vm6 = vcmask 1043459  }
  0x42   : > { %254 = vadd.xlane.f32.xlu0 %v221_v2  ;;  %v230_v7 = vld [vmem:[%s1061_s12 + $0x48] sm:$0xff]  ;;  %v229_v8 = vld [vmem:[%s1061_s12 + $0x40] sm:$0xff]  ;;  %v228_v9 = vld [vmem:[%s1061_s12 + $0x38] sm:$0xff]  ;;  %v351_v52 = vand.u32 127, %v350_v49  ;;  %v353_v56 = vshrl.u32 %v350_v49, 7  ;;  %vm516_vm7 = vcmask 1044484  }
  0x43   : > { %v224_v10 = vld [vmem:[%s1061_s12 + $0x18] sm:$0xff]  ;;  %v233_v11 = vld [vmem:[%s1061_s12 + $0x60] sm:$0xff]  ;;  %v231_v12 = vld [vmem:[%s1061_s12 + $0x50] sm:$0xff]  ;;  %vm518_vm8 = vcmask 1045509   ;;  %vm520_vm9 = vcmask 1046534   ;;  %vm522_vm10 = vcmask 1047559  }
  0x44   : > { %v232_v13 = vld [vmem:[%s1061_s12 + $0x58] sm:$0xff]  ;;  %v234_v14 = vld [vmem:[%s1061_s12 + $0x68] sm:$0xff]  ;;  %v237_v15 = vld [vmem:[%s1061_s12 + $0x80] sm:$0xff]  ;;  %v356_v55 = vadd.s32 4294967288, %v351_v52  ;;  %v363_v57 = vadd.s32 4294967280, %v351_v52  ;;  %v370_v58 = vadd.s32 4294967272, %v351_v52  ;;  %v1126_v62 = vsub.s32 %v351_v52, %v353_v56 }
  0x45   : > { %264 = vadd.xlane.f32.xlu1 %v226_v3  ;;  %v235_v16 = vld [vmem:[%s1061_s12 + $0x70] sm:$0xff]  ;;  %v236_v17 = vld [vmem:[%s1061_s12 + $0x78] sm:$0xff]  ;;  %v238_v18 = vld [vmem:[%s1061_s12 + $0x88] sm:$0xff]  ;;  %vm526_vm11 = vcmask 261120   ;;  %p694_p3 = scmp.ne.s32.totalorder %s925_s15, 1 }
  0x46   : > { %256 = vadd.xlane.f32.xlu0 %v222_v4  ;;  %v241_v19 = vld [vmem:[%s1061_s12 + $0xa0] sm:$0xff]  ;;  %v239_v20 = vld [vmem:[%s1061_s12 + $0x90] sm:$0xff]  ;;  %v240_v21 = vld [vmem:[%s1061_s12 + $0x98] sm:$0xff]  ;;  %v1124_v61 = vsub.s32 %v356_v55, %v353_v56  ;;  %v1128_v63 = vsub.s32 %v363_v57, %v353_v56  ;;  %v1130_v0 = vsub.s32 %v370_v58, %v353_v56 }
  0x47   : > { %v242_v22 = vld [vmem:[%s1061_s12 + $0xa8] sm:$0xff]  ;;  %v245_v23 = vld [vmem:[%s1061_s12 + $0xc0] sm:$0xff]  ;;  %v243_v24 = vld [vmem:[%s1061_s12 + $0xb0] sm:$0xff] }
  0x48   : > { %v244_v25 = vld [vmem:[%s1061_s12 + $0xb8] sm:$0xff]  ;;  %v246_v26 = vld [vmem:[%s1061_s12 + $0xc8] sm:$0xff]  ;;  %v249_v27 = vld [vmem:[%s1061_s12 + $0xe0] sm:$0xff] }
  0x49   : > { %266 = vadd.xlane.f32.xlu1 %v227_v5  ;;  %v247_v28 = vld [vmem:[%s1061_s12 + $0xd0] sm:$0xff]  ;;  %v248_v29 = vld [vmem:[%s1061_s12 + $0xd8] sm:$0xff]  ;;  %v250_v30 = vld [vmem:[%s1061_s12 + $0xe8] sm:$0xff] }
  0x4a   : > { %258 = vadd.xlane.f32.xlu0 %v223_v6  ;;  %v251_v31 = vld [vmem:[%s1061_s12 + $0xf0] sm:$0xff]  ;;  %v252_v32 = vld [vmem:[%s1061_s12 + $0xf8] sm:$0xff] }
  0x4d   : > { %272 = vadd.xlane.f32.xlu1 %v230_v7 }
  0x4e   : > { %270 = vadd.xlane.f32.xlu0 %v229_v8 }
  0x51   : > { %268 = vadd.xlane.f32.xlu1 %v228_v9 }
  0x52   : > { %260 = vadd.xlane.f32.xlu0 %v224_v10 }
  0x55   : > { %278 = vadd.xlane.f32.xlu1 %v233_v11 }
  0x56   : > { %274 = vadd.xlane.f32.xlu0 %v231_v12 }
  0x59   : > { %276 = vadd.xlane.f32.xlu1 %v232_v13 }
  0x5a   : > { %280 = vadd.xlane.f32.xlu0 %v234_v14 }
  0x5d   : > { %286 = vadd.xlane.f32.xlu1 %v237_v15 }
  0x5e   : > { %282 = vadd.xlane.f32.xlu0 %v235_v16 }
  0x61   : > { %284 = vadd.xlane.f32.xlu1 %v236_v17 }
  0x62   : > { %288 = vadd.xlane.f32.xlu0 %v238_v18 }
  0x65   : > { %294 = vadd.xlane.f32.xlu1 %v241_v19 }
  0x66   : > { %290 = vadd.xlane.f32.xlu0 %v239_v20 }
  0x69   : > { %292 = vadd.xlane.f32.xlu1 %v240_v21 }
  0x6a   : > { %296 = vadd.xlane.f32.xlu0 %v242_v22 }
  0x6d   : > { %302 = vadd.xlane.f32.xlu1 %v245_v23 }
  0x6e   : > { %298 = vadd.xlane.f32.xlu0 %v243_v24 }
  0x71   : > { %300 = vadd.xlane.f32.xlu1 %v244_v25 }
  0x72   : > { %304 = vadd.xlane.f32.xlu0 %v246_v26 }
  0x75   : > { %310 = vadd.xlane.f32.xlu1 %v249_v27 }
  0x76   : > { %306 = vadd.xlane.f32.xlu0 %v247_v28 }
  0x79   : > { %308 = vadd.xlane.f32.xlu1 %v248_v29 }
  0x7a   : > { %312 = vadd.xlane.f32.xlu0 %v250_v30 }
  0x7d   : > { %316 = vadd.xlane.f32.xlu1 %v252_v32 }
  0x7e   : > { %314 = vadd.xlane.f32.xlu0 %v251_v31 }
  0xca   : > { %v263_v33 = vpop.xlane.xlu1 %262 }
  0xcb   : > { %v255_v34 = vpop.xlane.xlu0 %254  ;;  %v380_v5 = vrot.slane %v263_v33, %v1126_v62 }
  0xcc   : > { %v355_v6 = vrot.slane %v255_v34, %v1126_v62 }
  0xce   : > { %v265_v35 = vpop.xlane.xlu1 %264 }
  0xcf   : > { %v257_v36 = vpop.xlane.xlu0 %256  ;;  %v384_v3 = vrot.slane %v265_v35, %v1124_v61 }
  0xd0   : > { %v360_v4 = vrot.slane %v257_v36, %v1124_v61 }
  0xd1   : > { %v385_v16 = vsel %vm361_vm1, %v384_v3, %v380_v5 }
  0xd2   : > { %v267_v37 = vpop.xlane.xlu1 %266  ;;  %v362_v17 = vsel %vm361_vm1, %v360_v4, %v355_v6 }
  0xd3   : > { %v259_v38 = vpop.xlane.xlu0 %258  ;;  %v389_v7 = vrot.slane %v267_v37, %v1128_v63 }
  0xd4   : > { %v367_v8 = vrot.slane %v259_v38, %v1128_v63 }
  0xd5   : > { %v390_v19 = vsel %vm368_vm2, %v389_v7, %v385_v16 }
  0xd6   : > { %v273_v39 = vpop.xlane.xlu1 %272  ;;  %v369_v20 = vsel %vm368_vm2, %v367_v8, %v362_v17 }
  0xd7   : > { %v271_v40 = vpop.xlane.xlu0 %270  ;;  %v403_v9 = vrot.slane %v273_v39, %v1124_v61 }
  0xd8   : > { %v399_v10 = vrot.slane %v271_v40, %v1126_v62 }
  0xda   : > { %v269_v41 = vpop.xlane.xlu1 %268  ;;  %v404_v21 = vsel %vm361_vm1, %v403_v9, %v399_v10  ;;  %v253_v9 = vld [vmem:[#allocation2] sm:$0xff] }
  0xdb   : > { %v261_v42 = vpop.xlane.xlu0 %260  ;;  %v394_v11 = vrot.slane %v269_v41, %v1130_v0 }
  0xdc   : > { %v374_v12 = vrot.slane %v261_v42, %v1130_v0 }
  0xdd   : > { %v395_v22 = vsel %vm375_vm3, %v394_v11, %v390_v19 }
  0xde   : > { %v1104_v43 = vpop.xlane.xlu1 %278  ;;  %v376_v23 = vsel %vm375_vm3, %v374_v12, %v369_v20 }
  0xdf   : > { %v275_v44 = vpop.xlane.xlu0 %274  ;;  %v418_v27 = vrot.slane %v1104_v43, %v1126_v62 }
  0xe0   : > { %v408_v15 = vrot.slane %v275_v44, %v1128_v63 }
  0xe2   : > { %v277_v45 = vpop.xlane.xlu1 %276  ;;  %v409_v28 = vsel %vm368_vm2, %v408_v15, %v404_v21 }
  0xe3   : > { %v1106_v46 = vpop.xlane.xlu0 %280  ;;  %v413_v18 = vrot.slane %v277_v45, %v1130_v0 }
  0xe4   : > { %v422_v24 = vrot.slane %v1106_v46, %v1124_v61 }
  0xe5   : > { %v414_v31 = vsel %vm375_vm3, %v413_v18, %v409_v28 }
  0xe6   : > { %v1108_v47 = vpop.xlane.xlu1 %286  ;;  %v423_v39 = vsel %vm361_vm1, %v422_v24, %v418_v27 }
  0xe7   : > { %v1110_v48 = vpop.xlane.xlu0 %282  ;;  %v437_v35 = vrot.slane %v1108_v47, %v1126_v62 }
  0xe8   : > { %v427_v29 = vrot.slane %v1110_v48, %v1128_v63 }
  0xea   : > { %v1112_v50 = vpop.xlane.xlu1 %284  ;;  %v428_v45 = vsel %vm368_vm2, %v427_v29, %v423_v39 }
  0xeb   : > { %v1114_v51 = vpop.xlane.xlu0 %288  ;;  %v432_v32 = vrot.slane %v1112_v50, %v1130_v0 }
  0xec   : > { %v441_v30 = vrot.slane %v1114_v51, %v1124_v61 }
  0xed   : > { %v433_v49 = vsel %vm375_vm3, %v432_v32, %v428_v45 }
  0xee   : > { %v1116_v53 = vpop.xlane.xlu1 %294  ;;  %v442_v46 = vsel %vm361_vm1, %v441_v30, %v437_v35 }
  0xef   : > { %v1118_v54 = vpop.xlane.xlu0 %290  ;;  %v456_v40 = vrot.slane %v1116_v53, %v1126_v62  ;;  %v511_v53 = vsel %vm510_vm4, %v395_v22, %v376_v23 }
  0xf0   : > { %v446_v33 = vrot.slane %v1118_v54, %v1128_v63  ;;  %v513_v57 = vsel %vm512_vm5, %v414_v31, %v511_v53 }
  0xf2   : > { %v1120_v59 = vpop.xlane.xlu1 %292  ;;  %v447_v50 = vsel %vm368_vm2, %v446_v33, %v442_v46 }
  0xf3   : > { %v1122_v60 = vpop.xlane.xlu0 %296  ;;  %v451_v36 = vrot.slane %v1120_v59, %v1130_v0 }
  0xf4   : > { %v460_v34 = vrot.slane %v1122_v60, %v1124_v61 }
  0xf5   : > { %v452_v54 = vsel %vm375_vm3, %v451_v36, %v447_v50 }
  0xf6   : > { %v1132_v1 = vpop.xlane.xlu1 %302  ;;  %v461_v51 = vsel %vm361_vm1, %v460_v34, %v456_v40 }
  0xf7   : > { %v1134_v2 = vpop.xlane.xlu0 %298  ;;  %v475_v47 = vrot.slane %v1132_v1, %v1126_v62 }
  0xf8   : > { %v465_v37 = vrot.slane %v1134_v2, %v1128_v63 }
  0xfa   : > { %v301_v13 = vpop.xlane.xlu1 %300  ;;  %v466_v55 = vsel %vm368_vm2, %v465_v37, %v461_v51 }
  0xfb   : > { %v305_v14 = vpop.xlane.xlu0 %304  ;;  %v470_v41 = vrot.slane %v301_v13, %v1130_v0 }
  0xfc   : > { %v479_v38 = vrot.slane %v305_v14, %v1124_v61 }
  0xfd   : > { %v471_v58 = vsel %vm375_vm3, %v470_v41, %v466_v55 }
  0xfe   : > { %v311_v25 = vpop.xlane.xlu1 %310  ;;  %v480_v56 = vsel %vm361_vm1, %v479_v38, %v475_v47 }
  0xff   : > { %v307_v26 = vpop.xlane.xlu0 %306  ;;  %v494_v59 = vrot.slane %v311_v25, %v1126_v62 }
 0x100   : > { %v484_v42 = vrot.slane %v307_v26, %v1128_v63 }
 0x102   : > { %v309_v43 = vpop.xlane.xlu1 %308  ;;  %v485_v60 = vsel %vm368_vm2, %v484_v42, %v480_v56 }
 0x103   : > { %v313_v44 = vpop.xlane.xlu0 %312  ;;  %v489_v48 = vrot.slane %v309_v43, %v1130_v0 }
 0x104   : > { %v498_v52 = vrot.slane %v313_v44, %v1124_v61  ;;  %v515_v61 = vsel %vm514_vm6, %v433_v49, %v513_v57 }
 0x105   : > { %v490_v3 = vsel %vm375_vm3, %v489_v48, %v485_v60  ;;  %v517_v6 = vsel %vm516_vm7, %v452_v54, %v515_v61 }
 0x106   : > { %v317_v2 = vpop.xlane.xlu1 %316  ;;  %v499_v7 = vsel %vm361_vm1, %v498_v52, %v494_v59  ;;  %v519_v8 = vsel %vm518_vm8, %v471_v58, %v517_v6 }
 0x107   : > { %v315_v1 = vpop.xlane.xlu0 %314  ;;  %v508_v5 = vrot.slane %v317_v2, %v1130_v0  ;;  %v521_v10 = vsel %vm520_vm9, %v490_v3, %v519_v8 }
 0x108   : > { %v503_v4 = vrot.slane %v315_v1, %v1128_v63 }
 0x10a   : > { %v504_v62 = vsel %vm368_vm2, %v503_v4, %v499_v7 }
 0x10b   : > { %v509_v11 = vsel %vm375_vm3, %v508_v5, %v504_v62  ;;  %531 = sbr.rel (%p694_p3) target bundleno = 482 (0x1e2), region = 48 }
 0x10c   : > { %v523_v12 = vsel %vm522_vm10, %v509_v11, %v521_v10 }
 0x10d   : > { %v525_v13 = vadd.f32 %v523_v12, %v253_v9 }
 0x10f   : > { %527 = vst.msk [vmem:[#allocation2] sm:$0xff] %vm526_vm11, %v525_v13 }
 0x110   : > { %v795_v63 = vld [vmem:[#allocation6 + $0x8] sm:$0xff]   ;;  %v943_v0 = vmov 0.0   ;;  %v796_v14 = vld [vmem:[#allocation6] sm:$0xff]   ;;  %vm944_vm12 = vmmov 0   ;;  %v695_v18 = vld [vmem:[%s1253_s2] ss:$0 sm:$0xff] }
 0x111   : > { %706 = vmatprep.subr.bf16.mxu0 %v943_v0  ;;  %710 = vmatprep.mubr.msk.bf16.mxu0 %vm944_vm12, %v943_v0 }
 0x112   : > { %707 = vmatpush3.bf16.msra.mxu0 %v795_v63 }
 0x113   : > { %708 = vmatprep.subr.bf16.mxu0 %v943_v0 }
 0x116   : > { %v532_v15 = vld [vmem:[#allocation2] sm:$0xff]  ;;  %709 = vmatpush3.bf16.msra.mxu0 %v796_v14 }
 0x117   : > { %v533_v16 = vmul.f32 0.00390625, %v532_v15 }
 0x119   : > { %v534_v17 = vpack.c.bf16 %v533_v16, %v533_v16 }
 0x11b   : > { %711 = vmatmul.mubr.msk.bf16.vlgmr.msra.gmra.mxu0 %vm526_vm11, %v534_v17 }
 0x1db   : > { %v595_v19 = vpop.f32.mrf.mxu0 }
 0x1dc   : > { %v596_v20 = vadd.f32 %v695_v18, %v595_v19 }
 0x1dd   : > { %v712_v21 = vpop.f32.mrf.mxu0 }
 0x1de   : > { %601 = vst [vmem:[#allocation8] sm:$0xff] %v596_v20 }
 0x1df   : > { %v598_v22 = vpop.f32.mrf.mxu0 }
 0x1e1   : > { %v713_v23 = vpop.f32.mrf.mxu0 }
 0x1e2 PF: > { %p1218_p12 = scmp.eq.s32.totalorder %s684_s18, 1  ;;  %s945_s21 = smov [#allocation8]  }
 0x1e3   : > { %s611_s26 = sshll.u32 %s945_s21, 4  ;;  %s612_s26 = int_to_ptr.vmem [resolvable:$true] %s611_s26 }
 0x1e4   : > { %s851_s11 = scalar_lea.vmem %s612_s26, 128  ;;  %p858_p11 = scmp.lt.s32.totalorder %s612_s26, %s612_s26 }
 0x1e5   : > { %p852_p5 = scmp.ne.s32.totalorder %s612_s26, %s851_s11  ;;  %p859_p13 = scmp.lt.s32.totalorder %s851_s11, %s851_s11 }
 0x1e7   : > { %p853_p7 = pnand %p852_p5, %p1218_p12  ;;  %p860_p0 = por %p859_p13, %p858_p11 }
 0x1e9   : > { %p854_p10 = pneg %p853_p7 }
 0x1eb   : > { %p861_p1 = pnand %p860_p0, %p854_p10 }
 0x1ed   : > { %864 = shalt.err (!%p861_p1)
}
 0x1ee   : > { %721 = dma.vmem_to_hbm [thread:$0]  (%p1218_p12), %s612_s26, 128, %s1254_s3, [#allocation5]  }
 0x1ef   : > { %908 = dma.done.wait (%p1218_p12), [#allocation5], 128  }
 0x1f0   : > { %910 = vsyncadd (%p1218_p12), [#allocation5], 4294967168 }
 0x1f1 PF: > { %s18_s17 = sadd.s32 1, %s933_s17   ;;  %s1263_s12 = smov %s917_s13 }
 0x1f2   : > { %p15_p2 = scmp.ge.s32.totalorder %s18_s17, 4   ;;  %s1264_s13 = smov %s921_s14 }
 0x1f3   : > { %s1265_s14 = smov %s1051_s27  ;;  %s1266_s15 = smov %s929_s16 }
 0x1f4   : > { %s1267_s16 = smov %s1269_s5  ;;  %17 = sbr.rel (!%p15_p2) target bundleno = 6 (0x6), region = 82 }
 0x1f9   :  { %624 = vsyncpa [#allocation4], 1 }
 0x1fa   :  { %626 = vsyncpa [#allocation4 + $0x1], 1 }
 0x1fb   :  { %627 = vsyncpa [#allocation7], 1 }
 0x1fc   :  { %628 = vsyncpa [#allocation5], 1 }
 0x1fd   :  { %630 = vsyncpa [#allocation5 + $0x1], 1 }

</bundles_post_ra>
